<compile_context>
chip_gen: v5e
topology: v5e:2x2
jax: 0.10.0
libtpu: 0.0.40
codegen_flags: <defaults>
</compile_context>

<pallas_src>
import jax
import jax.numpy as jnp
from jax.experimental import pallas as pl
from jax.experimental.pallas import tpu as pltpu

EPS = 1e-12  # matches the PyTorch module default (epsilon or 1e-12)


def _ln_rows_kernel(x_ref, gamma_ref, beta_ref, o_ref):
    # x_ref:     (1, tS, D)  row tile of inputs for one batch element
    # gamma_ref: (B, D)      resident per-batch conditional scale (f32)
    # beta_ref:  (B, D)      resident per-batch conditional shift (f32)
    b = pl.program_id(0)

    x = x_ref[...].astype(jnp.float32)                  # (1, tS, D)
    gamma = gamma_ref[pl.ds(b, 1), :]                   # (1, D), broadcasts over rows
    beta = beta_ref[pl.ds(b, 1), :]                     # (1, D)

    d = x.shape[-1]
    inv_d = 1.0 / d

    # Single traversal: row-sum and row-sum-of-squares -> mean / var.
    s1 = jnp.sum(x, axis=-1, keepdims=True)             # (1, tS, 1)
    s2 = jnp.sum(x * x, axis=-1, keepdims=True)         # (1, tS, 1)
    mean = s1 * inv_d
    var = jnp.maximum(s2 * inv_d - mean * mean, 0.0)    # clamp for cancellation safety
    inv_std = jax.lax.rsqrt(var + EPS)                  # EUP rsqrt (free slot)

    out = (x - mean) * (inv_std * gamma) + beta
    o_ref[...] = out.astype(o_ref.dtype)


def _choose_row_tile(B, S, D, itemsize):
    """Generation-aware row-tile size and vmem limit.

    Budgets total kernel VMEM: 2x double-buffered input block + 2x output block
    (input dtype) plus ~3 full-tile f32 temporaries live in the body.
    """
    cap = 128 << 20
    try:
        cap = pltpu.get_tpu_info().vmem_capacity_bytes
    except Exception:  # pragma: no cover - conservative fallback
        pass

    small_vmem = cap <= (64 << 20)          # v7x-class TensorCore
    total_budget = (32 << 20) if small_vmem else (64 << 20)
    vmem_limit = (48 << 20) if small_vmem else (96 << 20)

    # Per-row VMEM cost: 4 * (block in input dtype) + ~3 full-tile f32 temps.
    bytes_per_row = max(1, D * (4 * itemsize + 3 * 4))
    max_rows = max(8, total_budget // bytes_per_row)

    if S <= 8 or max_rows >= S:
        t = S                                # full extent block -- always legal
    else:
        t = max(8, (max_rows // 8) * 8)      # multiple of 8, < S -- legal

    # v7x megacore balance: aim for >= 4 total grid steps and an even count,
    # shrinking tS slightly (in multiples of 8) when cheap to do so.
    def nsteps(tile):
        return B * ((S + tile - 1) // tile)

    for _ in range(8):
        if t <= 8:
            break
        if nsteps(t) >= 4 and nsteps(t) % 2 == 0:
            break
        nt = max(8, ((t // 2) // 8) * 8)
        if nt >= t:
            break
        t = nt

    return t, vmem_limit


def conditional_layer_norm(x, cond, w_beta, w_gamma, beta, gamma,
                           donate_x=False):
    """x: (B, S, D), cond: (B, Dc),
       w_beta / w_gamma: (D, Dc)  (nn.Linear weight layout),
       beta / gamma: (D,)."""
    B, S, D = x.shape

    # --- hoisted conditional affine: two clean MXU matmuls in XLA ------------
    # Contract cond's Dc axis directly against the (D, Dc) nn.Linear weights;
    # no concat / transpose copy is materialized.
    cond_f = jnp.asarray(cond, jnp.float32)
    dn = (((1,), (1,)), ((), ()))
    beta_b = jax.lax.dot_general(
        cond_f, jnp.asarray(w_beta, jnp.float32), dn,
        preferred_element_type=jnp.float32) + jnp.asarray(beta, jnp.float32)
    gamma_b = jax.lax.dot_general(
        cond_f, jnp.asarray(w_gamma, jnp.float32), dn,
        preferred_element_type=jnp.float32) + jnp.asarray(gamma, jnp.float32)
    # beta_b / gamma_b: (B, D) f32

    # --- streaming layernorm kernel over (batch, row-tile) grid --------------
    tS, vmem_limit = _choose_row_tile(B, S, D, jnp.dtype(x.dtype).itemsize)
    grid = (B, pl.cdiv(S, tS))

    # x donated by caller -> alias to output (halves peak HBM footprint).
    io_aliases = {0: 0} if donate_x else {}

    return pl.pallas_call(
        _ln_rows_kernel,
        out_shape=jax.ShapeDtypeStruct((B, S, D), x.dtype),
        grid_spec=pltpu.PrefetchScalarGridSpec(
            num_scalar_prefetch=0,
            grid=grid,
            in_specs=[
                pl.BlockSpec((1, tS, D), lambda b, s: (b, s, 0)),   # x row tile
                pl.BlockSpec((B, D), lambda b, s: (0, 0)),          # gamma_b (resident)
                pl.BlockSpec((B, D), lambda b, s: (0, 0)),          # beta_b  (resident)
            ],
            out_specs=pl.BlockSpec((1, tS, D), lambda b, s: (b, s, 0)),
        ),
        compiler_params=pltpu.CompilerParams(
            dimension_semantics=("parallel", "parallel"),
            vmem_limit_bytes=vmem_limit,
        ),
        input_output_aliases=io_aliases,
    )(x, gamma_b, beta_b)


def reference(x, cond, w_beta, w_gamma, beta, gamma):
    # pure-JAX mirror of the PyTorch forward (conditional=True, center=True, scale=True)
    cond_b = cond @ w_beta.T + beta
    cond_g = cond @ w_gamma.T + gamma
    cond_b = cond_b[:, None, :]
    cond_g = cond_g[:, None, :]
    out = x
    mean = jnp.mean(out, axis=-1, keepdims=True)
    out = out - mean
    var = jnp.mean(out ** 2, axis=-1, keepdims=True)
    out = out / jnp.sqrt(var + EPS)
    out = out * cond_g
    out = out + cond_b
    return out


if __name__ == "__main__":
    B, S, D, Dc = 2, 16, 128, 32   # D multiple of 128 -> lane-dense stores

    key = jax.random.PRNGKey(0)
    kx, kc, kwb, kwg = jax.random.split(key, 4)

    x = jax.random.normal(kx, (B, S, D), dtype=jnp.float32)
    cond = jax.random.normal(kc, (B, Dc), dtype=jnp.float32)

    # Parameters (module __init__ shapes). beta=zeros, gamma=ones per __init__;
    # dense weights given small nonzero values so the conditional path is
    # actually exercised (the module's own init would zero them).
    beta = jnp.zeros((D,), jnp.float32)
    gamma = jnp.ones((D,), jnp.float32)
    w_beta = 0.01 * jax.random.normal(kwb, (D, Dc), dtype=jnp.float32)   # beta_dense.weight
    w_gamma = 0.01 * jax.random.normal(kwg, (D, Dc), dtype=jnp.float32)  # gamma_dense.weight

    out = conditional_layer_norm(x, cond, w_beta, w_gamma, beta, gamma)
    out = jax.block_until_ready(out)

    ref = reference(x, cond, w_beta, w_gamma, beta, gamma)
    assert out.shape == (B, S, D)
    assert jnp.allclose(out, ref, atol=1e-4, rtol=1e-4), "mismatch vs reference"

    print("KERNEL_OK")
</pallas_src>

<mosaic_0001>
module attributes {stable_mosaic.version = 11 : i64} {
  func.func @_ln_rows_kernel(%arg0: i32, %arg1: i32, %arg2: memref<1x8x128xf32, #tpu.memory_space<vmem>>, %arg3: memref<2x128xf32, #tpu.memory_space<vmem>>, %arg4: memref<2x128xf32, #tpu.memory_space<vmem>>, %arg5: memref<1x8x128xf32, #tpu.memory_space<vmem>>) attributes {dimension_semantics = [#tpu.dimension_semantics<parallel>, #tpu.dimension_semantics<parallel>], iteration_bounds = array<i64: 2, 2>, scalar_prefetch = 0 : i64, scratch_operands = 0 : i64, tpu.core_type = #tpu.core_type<tc>, window_params = [{transform_indices = @transform_0, window_bounds = array<i64: 1, 8, 128>}, {pipeline_mode = #tpu.pipeline_mode<synchronous>, transform_indices = @transform_1, window_bounds = array<i64: 2, 128>}, {pipeline_mode = #tpu.pipeline_mode<synchronous>, transform_indices = @transform_2, window_bounds = array<i64: 2, 128>}, {transform_indices = @transform_3, window_bounds = array<i64: 1, 8, 128>}]} {
    %c0 = arith.constant 0 : index
    %c0_0 = arith.constant 0 : index
    %c0_1 = arith.constant 0 : index
    %0 = vector.load %arg2[%c0, %c0_0, %c0_1] : memref<1x8x128xf32, #tpu.memory_space<vmem>>, vector<1x8x128xf32>
    %1 = arith.index_cast %arg0 : i32 to index
    %c0_2 = arith.constant 0 : index
    %2 = vector.load %arg3[%1, %c0_2] : memref<2x128xf32, #tpu.memory_space<vmem>>, vector<1x128xf32>
    %3 = arith.index_cast %arg0 : i32 to index
    %c0_3 = arith.constant 0 : index
    %4 = vector.load %arg4[%3, %c0_3] : memref<2x128xf32, #tpu.memory_space<vmem>>, vector<1x128xf32>
    %cst = arith.constant dense<0.000000e+00> : vector<1x8xf32>
    %5 = vector.multi_reduction <add>, %0, %cst [2] : vector<1x8x128xf32> to vector<1x8xf32>
    %6 = vector.shape_cast %5 : vector<1x8xf32> to vector<1x8x1xf32>
    %7 = arith.mulf %0, %0 : vector<1x8x128xf32>
    %cst_4 = arith.constant dense<0.000000e+00> : vector<1x8xf32>
    %8 = vector.multi_reduction <add>, %7, %cst_4 [2] : vector<1x8x128xf32> to vector<1x8xf32>
    %9 = vector.shape_cast %8 : vector<1x8xf32> to vector<1x8x1xf32>
    %cst_5 = arith.constant 7.812500e-03 : f32
    %10 = vector.broadcast %cst_5 : f32 to vector<1x8x1xf32>
    %11 = arith.mulf %6, %10 : vector<1x8x1xf32>
    %cst_6 = arith.constant 7.812500e-03 : f32
    %12 = vector.broadcast %cst_6 : f32 to vector<1x8x1xf32>
    %13 = arith.mulf %9, %12 : vector<1x8x1xf32>
    %14 = arith.mulf %11, %11 : vector<1x8x1xf32>
    %15 = arith.subf %13, %14 : vector<1x8x1xf32>
    %cst_7 = arith.constant 0.000000e+00 : f32
    %16 = vector.broadcast %cst_7 : f32 to vector<1x8x1xf32>
    %17 = arith.maximumf %15, %16 : vector<1x8x1xf32>
    %cst_8 = arith.constant 9.99999996E-13 : f32
    %18 = vector.broadcast %cst_8 : f32 to vector<1x8x1xf32>
    %19 = arith.addf %17, %18 : vector<1x8x1xf32>
    %20 = math.rsqrt %19 : vector<1x8x1xf32>
    %21 = vector.broadcast %11 : vector<1x8x1xf32> to vector<1x8x128xf32>
    %22 = arith.subf %0, %21 : vector<1x8x128xf32>
    %23 = vector.shape_cast %2 : vector<1x128xf32> to vector<1x1x128xf32>
    %24 = vector.broadcast %20 : vector<1x8x1xf32> to vector<1x8x128xf32>
    %25 = vector.broadcast %23 : vector<1x1x128xf32> to vector<1x8x128xf32>
    %26 = arith.mulf %24, %25 : vector<1x8x128xf32>
    %27 = arith.mulf %22, %26 : vector<1x8x128xf32>
    %28 = vector.shape_cast %4 : vector<1x128xf32> to vector<1x1x128xf32>
    %29 = vector.broadcast %28 : vector<1x1x128xf32> to vector<1x8x128xf32>
    %30 = arith.addf %27, %29 : vector<1x8x128xf32>
    %c0_9 = arith.constant 0 : index
    %c0_10 = arith.constant 0 : index
    %c0_11 = arith.constant 0 : index
    %31 = vector.load %arg5[%c0_9, %c0_10, %c0_11] : memref<1x8x128xf32, #tpu.memory_space<vmem>>, vector<1x8x128xf32>
    tpu.vector_store %arg5[%c0_9, %c0_10, %c0_11], %30 {strides = array<i32>} : memref<1x8x128xf32, #tpu.memory_space<vmem>>, vector<1x8x128xf32>,
    return
  }
  func.func @transform_0(%arg0: i32, %arg1: i32) -> (i32, i32, i32) {
    %c0_i32 = arith.constant 0 : i32
    %c0_i32_0 = arith.constant 0 : i32
    return %arg0, %arg1, %c0_i32 : i32, i32, i32
  }
  func.func @transform_1(%arg0: i32, %arg1: i32) -> (i32, i32) {
    %c0_i32 = arith.constant 0 : i32
    %c0_i32_0 = arith.constant 0 : i32
    %c0_i32_1 = arith.constant 0 : i32
    return %c0_i32, %c0_i32_0 : i32, i32
  }
  func.func @transform_2(%arg0: i32, %arg1: i32) -> (i32, i32) {
    %c0_i32 = arith.constant 0 : i32
    %c0_i32_0 = arith.constant 0 : i32
    %c0_i32_1 = arith.constant 0 : i32
    return %c0_i32, %c0_i32_0 : i32, i32
  }
  func.func @transform_3(%arg0: i32, %arg1: i32) -> (i32, i32, i32) {
    %c0_i32 = arith.constant 0 : i32
    %c0_i32_0 = arith.constant 0 : i32
    return %arg0, %arg1, %c0_i32 : i32, i32, i32
  }
}

</mosaic_0001>

<bundles_post_ra>
// kernel: tpu_custom_call.1
= control target key start
LH: loop header
LB: loop body
LE: loop exit
PB: predicated region body
PF: predicated region fallthrough
CT: control target
= control target key end

     0   :  { %s912_s0 = inlined_call_operand.hbm [shape: f32[2,16,128], index: 0, kind: input, shape index: {}]   ;;  %s913_s1 = inlined_call_operand.hbm [shape: f32[2,128], index: 1, kind: input, shape index: {}]   ;;  %s914_s2 = inlined_call_operand.hbm [shape: f32[2,128], index: 2, kind: input, shape index: {}]   ;;  %s915_s3 = inlined_call_operand.hbm [shape: f32[2,16,128], index: 3, kind: output, shape index: {}]  }
   0x1   :  { %920 = sst [smem:[#allocation16_spill]] %s913_s1 }
   0x2   :  { %921 = sst [smem:[#allocation17_spill]] %s914_s2 }
   0x3   :  { %8 = vsyncpa [#allocation3], 0 }
   0x4   :  { %10 = vsyncpa [#allocation3 + $0x1], 0 }
   0x5   :  { %11 = vsyncpa [#allocation6], 0 }
   0x6   :  { %12 = vsyncpa [#allocation4], 0 }
   0x7   :  { %14 = vsyncpa [#allocation4 + $0x1], 0  ;;  %s730_s12 = smov 0   ;;  %s732_s13 = smov 0  }
   0x8   :  { %s734_s14 = smov 0   ;;  %s736_s15 = smov 0  }
   0x9   :  { %s738_s16 = smov 0   ;;  %s740_s17 = smov 0  }
   0xa   :  { %s742_s18 = smov 0   ;;  %s744_s19 = smov 0  }
   0xb LB: > { %922 = sst [smem:[#allocation12_spill]] %s678_s12  ;;  %s392_s20 = sadd.s32 4294967295, %s706_s19   ;;  %s706_s19 = sphi %s744_s19, %s20_s19   ;;  %s702_s18 = sphi %s742_s18, %s945_s18   ;;  %s698_s17 = sphi %s740_s17, %s944_s17   ;;  %s694_s16 = sphi %s738_s16, %s943_s16   ;;  %s690_s15 = sphi %s736_s15, %s942_s15   ;;  %s686_s14 = sphi %s734_s14, %s941_s14   ;;  %s682_s13 = sphi %s732_s13, %s940_s13   ;;  %s678_s12 = sphi %s730_s12, %s939_s12  }
   0xc   : > { %s393_s21 = sadd.s32 4294967294, %s706_s19   ;;  %p54_p0 = scmp.ne.s32.totalorder %s682_s13, %s678_s12 }
   0xd   : > { %p774_p1 = scmp.eq.s32.totalorder %s392_s20, 0  ;;  %p778_p2 = scmp.eq.s32.totalorder %s392_s20, 3 }
   0xe   : > { %p128_p3 = scmp.eq.s32.totalorder %s393_s21, 3  ;;  %p394_p5 = scmp.ge.s32.totalorder %s706_s19, 1 }
   0xf   : > { %p784_p4 = por %p774_p1, %p54_p0  ;;  %p135_p7 = scmp.lt.s32.totalorder %s706_s19, 5 }
  0x10   : > { %p789_p6 = por %p128_p3, %p54_p0  ;;  %s928_s1 = sld [smem:[#allocation16_spill]] }
  0x11   : > { %p797_p8 = pnand %p394_p5, %p135_p7  ;;  %s708_s30 = smov [#allocation5]  }
  0x12   : > { %s926_s25 = scalar_select %p789_p6, 1, 0 }
  0x13   : > { %p423_p9 = pneg %p797_p8  ;;  %s149_s4 = sshll.u32 %s708_s30, 4  ;;  %s150_s4 = int_to_ptr.vmem [resolvable:$true] %s149_s4 }
  0x14   : > { %927 = sst [smem:[#allocation13_spill]] %s926_s25  ;;  %s709_s8 = smov [#allocation7]  }
  0x15   : > { %s930_s2 = sld [smem:[#allocation17_spill]]  ;;  %p424_p10 = pnand %p423_p9, %p774_p1 }
  0x16   : > { %s147_s28 = sshll.u32 %s928_s1, 4  ;;  %s161_s9 = sshll.u32 %s709_s8, 4  ;;  %s148_s28 = int_to_ptr.hbm [resolvable:$true] %s147_s28  ;;  %s162_s9 = int_to_ptr.vmem [resolvable:$true] %s161_s9 }
  0x17   : > { %426 = dma.hbm_to_vmem [thread:$0]  (!%p424_p10), %s148_s28, 32, %s150_s4, [#allocation6]  }
  0x18   : > { %s29_s10 = sadd.s32 1, %s698_s17  ;;  %s32_s11 = sadd.s32 1, %s702_s18 }
  0x19   : > { %p30_p11 = scmp.ge.s32.totalorder %s29_s10, 2  ;;  %s41_s20 = sadd.s32 1, %s686_s14 }
  0x1a   : > { %p48_p12 = scmp.ne.s32.totalorder %s686_s14, %s682_s13  ;;  %p49_p13 = scmp.eq.s32.totalorder %s706_s19, 0 }
  0x1b   : > { %s159_s7 = sshll.u32 %s930_s2, 4  ;;  %s947_s10 = smov (%p30_p11, %s29_s10), 0  ;;  %s160_s7 = int_to_ptr.hbm [resolvable:$true] %s159_s7 }
  0x1c   : > { %429 = dma.hbm_to_vmem [thread:$0]  (!%p424_p10), %s160_s7, 32, %s162_s9, [#allocation6]  }
  0x1d   : > { %931 = sst [smem:[#allocation14_spill]] %s947_s10  ;;  %s949_s11 = smov (!%p30_p11, %s32_s11), %s702_s18 }
  0x1e   : > { %s37_s21 = ssub.s32 %s698_s17, %s947_s10  ;;  %p819_p0 = por %p49_p13, %p48_p12 }
  0x1f   : > { %p34_p3 = scmp.ge.s32.totalorder %s949_s11, 2  ;;  %p825_p5 = por %p778_p2, %p48_p12 }
  0x20   : > { %p440_p7 = scmp.lt.s32.totalorder %s706_s19, 4  ;;  %s172_s28 = sand.u32 1, %s686_s14  }
  0x21   : > { %s951_s11 = smov (%p34_p3, %s949_s11), 0  ;;  %s398_s30 = sshll.u32 %s172_s28, 3 }
  0x22   : > { %934 = sst [smem:[#allocation15_spill]] %s951_s11  ;;  %s36_s4 = ssub.s32 %s702_s18, %s951_s11 }
  0x23   : > { %s38_s5 = sor.u32 %s37_s21, %s36_s4  ;;  %s399_s6 = sshll.u32 %s702_s18, 1 }
  0x24   : > { %p39_p9 = scmp.eq.s32.totalorder %s38_s5, 0  ;;  %s180_s7 = sadd.s32 %s698_s17, %s399_s6 }
  0x25   : > { %s400_s8 = sshll.u32 %s180_s7, 3  ;;  %s176_s9 = scalar_lea.vmem [#allocation2], %s398_s30 }
  0x26   : > { %s186_s23 = sshll.u32 %s176_s9, 4  ;;  %s182_s25 = scalar_lea.hbm %s912_s0, %s400_s8  ;;  %s187_s23 = int_to_ptr.vmem [resolvable:$true] %s186_s23 }
  0x27   : > { %s838_s1 = scalar_select %p39_p9, %s686_s14, %s41_s20  }
  0x28   : > { %s184_s12 = sshll.u32 %s182_s25, 4  ;;  %p431_p2 = pnand %p440_p7, %p819_p0  ;;  %s185_s12 = int_to_ptr.hbm [resolvable:$true] %s184_s12 }
  0x29   : > { %s173_s11 = scalar_lea.sflag [#allocation3], %s172_s28  ;;  %195 = sbr.rel (%p797_p8) target bundleno = 209 (0xd1), region = 32 }
  0x2a   : > { %433 = dma.hbm_to_vmem [thread:$0]  (!%p431_p2), %s185_s12, 128, %s187_s23, %s173_s11  }
  0x2b   : > { %s850_s21 = sand.u32 (!%p797_p8), 1, %s682_s13  }
  0x2c   : > { %s402_s2 = sshll.u32 (!%p797_p8), %s850_s21, 3  ;;  %s198_s10 = scalar_lea.sflag (!%p797_p8), [#allocation3], %s850_s21 }
  0x2d   : > { %s201_s25 = scalar_lea.vmem (!%p797_p8), [#allocation2], %s402_s2 }
  0x2e   : > { %665 = dma.done.wait (%p784_p4), %s198_s10, 128  }
  0x2f   : > { %667 = vsyncadd (%p784_p4), %s198_s10, 4294967168 }
  0x30   : > { %669 = dma.done.wait (%p774_p1), [#allocation6], 64  }
  0x31   : > { %671 = vsyncadd (%p774_p1), [#allocation6], 4294967232  ;;  %v235_v0 = vld [vmem:[%s201_s25] sm:$0xff]  ;;  %s236_s12 = scalar_lea.vmem [#allocation5], %s694_s16  ;;  %s238_s29 = scalar_lea.vmem [#allocation7], %s694_s16 }
  0x32   : > { %240 = vadd.xlane.f32.xlu0 %v235_v0  ;;  %v242_v1 = vmul.f32 %v235_v0, %v235_v0  ;;  %s407_s22 = sshll.u32 %s694_s16, 1  ;;  %v510_v15 = vld [vmem:[%s236_s12] ss:$0 sm:$0xff]  ;;  %s269_s4 = scalar_lea.sflag [#allocation4], %s850_s21 }
  0x33   : > { %s279_s24 = sadd.s32 %s690_s15, %s407_s22  ;;  %v511_v20 = vld [vmem:[%s238_s29] ss:$0 sm:$0xff]  ;;  %s234_s15 = scalar_lea.vmem [#allocation8], %s402_s2 }
  0x34   : > { %s408_s11 = sshll.u32 %s279_s24, 3  ;;  %s283_s16 = sshll.u32 %s234_s15, 4  ;;  %s284_s16 = int_to_ptr.vmem [resolvable:$true] %s283_s16 }
  0x35   : > { %s281_s28 = scalar_lea.hbm %s915_s3, %s408_s11  ;;  %s624_s9 = scalar_lea.hbm %s915_s3, 32 }
  0x36   : > { %s285_s30 = sshll.u32 %s281_s28, 4  ;;  %s286_s30 = int_to_ptr.hbm [resolvable:$true] %s285_s30 }
  0x37   : > { %s618_s5 = sshra.s32 %s286_s30, 4  ;;  %s619_s5 = int_to_ptr.hbm [resolvable:$true] %s618_s5 }
  0x38   : > { %s620_s6 = scalar_lea.hbm %s619_s5, 8  ;;  %p625_p10 = scmp.lt.s32.totalorder %s619_s5, %s915_s3 }
  0x39   : > { %p621_p1 = scmp.ne.s32.totalorder %s619_s5, %s620_s6  ;;  %p626_p11 = scmp.lt.s32.totalorder %s624_s9, %s620_s6 }
  0x3a   : > { %243 = vadd.xlane.f32.xlu0 %v242_v1 }
  0x3b   : > { %p622_p4 = pnand %p621_p1, %p825_p5  ;;  %p627_p12 = por %p626_p11, %p625_p10 }
  0x3d   : > { %p623_p8 = pneg %p622_p4 }
  0x3f   : > { %p628_p13 = pnand %p627_p12, %p623_p8 }
  0xa5   : > { %v241_v2 = vpop.xlane.xlu0 %240 }
  0xa6   : > { %v245_v3 = vmul.f32 0.0078125, %v241_v2 }
  0xa8   : > { %v247_v5 = vmul.f32 %v245_v3, %v245_v3  ;;  %v261_v18 = vsub.f32 %v235_v0, %v245_v3 }
  0xad   : > { %v244_v4 = vpop.xlane.xlu0 %243 }
  0xae   : > { %v246_v6 = vmul.f32 0.0078125, %v244_v4 }
  0xb0   : > { %v248_v7 = vsub.f32 %v246_v6, %v247_v5 }
  0xb2   : > { %v249_v8 = vmax.f32 %v248_v7, 0.0 }
  0xb4   : > { %v250_v9 = vadd.f32 1e-12, %v249_v8 }
  0xb6   : > { %512 = vrsqrt.f32 %v250_v9  ;;  %vm257_vm1 = vweird.f32 %v250_v9 }
  0xbc   : > { %v513_v10 = vpop.eup %512 }
  0xbd   : > { %v252_v11 = vmul.f32 %v513_v10, %v250_v9  ;;  %vm258_vm0 = vweird.f32 %v513_v10 }
  0xbe   : > { %vm259_vm2 = vmor %vm257_vm1, %vm258_vm0 }
  0xbf   : > { %v253_v12 = vmul.f32 %v513_v10, %v252_v11 }
  0xc1   : > { %v254_v13 = vmul.f32 0.5, %v253_v12 }
  0xc3   : > { %v255_v14 = vsub.f32 1.5, %v254_v13 }
  0xc5   : > { %v256_v16 = vmul.f32 %v513_v10, %v255_v14 }
  0xc7   : > { %v260_v17 = vsel %vm259_vm2, %v513_v10, %v256_v16 }
  0xc8   : > { %v263_v19 = vmul.f32 %v510_v15, %v260_v17 }
  0xca   : > { %v264_v21 = vmul.f32 %v263_v19, %v261_v18 }
  0xcc   : > { %v266_v22 = vadd.f32 %v511_v20, %v264_v21 }
  0xce   : > { %267 = vst [vmem:[%s234_s15] sm:$0xff] %v266_v22 }
  0xcf   : > { %631 = shalt.err (!%p628_p13)
}
  0xd0   : > { %421 = dma.vmem_to_hbm [thread:$0]  (%p825_p5), %s284_s16, 128, %s286_s30, %s269_s4  }
  0xd1 PF: > { %s935_s21 = sld [smem:[#allocation12_spill]]  ;;  %p443_p0 = scmp.ge.s32.totalorder %s706_s19, 2 }
  0xd3   : > { %p435_p3 = pnand %p443_p0, %p789_p6 }
  0xd5   : > { %p436_p7 = pneg %p435_p3 }
  0xd7   : > { %s297_s25 = sand.u32 1, %s935_s21  }
  0xd8   : > { %s298_s12 = scalar_lea.sflag [#allocation4], %s297_s25 }
  0xd9   : > { %673 = dma.done.wait (%p436_p7), %s298_s12, 128  }
  0xda   : > { %675 = vsyncadd (%p436_p7), %s298_s12, 4294967168  ;;  %s20_s19 = sadd.s32 1, %s706_s19   ;;  %s937_s27 = sld [smem:[#allocation14_spill]] }
  0xdb   : > { %p17_p9 = scmp.ge.s32.totalorder %s20_s19, 6   ;;  %s938_s29 = sld [smem:[#allocation15_spill]] }
  0xdc   : > { %s939_s12 = smov %s682_s13  ;;  %s940_s13 = smov %s686_s14 }
  0xdd   : > { %s941_s14 = smov %s838_s1  ;;  %s942_s15 = smov %s698_s17 }
  0xde   : > { %s943_s16 = smov %s702_s18  ;;  %19 = sbr.rel (!%p17_p9) target bundleno = 11 (0xb), region = 87 }
  0xe0   : > { %s944_s17 = smov %s937_s27 }
  0xe1   : > { %s945_s18 = smov %s938_s29 }
  0xe3   :  { %304 = vsyncpa [#allocation3], 1 }
  0xe4   :  { %306 = vsyncpa [#allocation3 + $0x1], 1 }
  0xe5   :  { %307 = vsyncpa [#allocation6], 1 }
  0xe6   :  { %308 = vsyncpa [#allocation4], 1 }
  0xe7   :  { %310 = vsyncpa [#allocation4 + $0x1], 1 }

</bundles_post_ra>
